<compile_context>
chip_gen: v6e
topology: v6e:2x2x1
jax: 0.10.0
libtpu: 0.0.40
codegen_flags: <defaults>
</compile_context>

<pallas_src>
import functools
import math

import jax
import jax.numpy as jnp
from jax import lax
from jax.experimental import pallas as pl
from jax.experimental.pallas import tpu as pltpu


# ----------------------------- Group: cyclic C4 ------------------------------
# Stand-in for the `group` dependency: the cyclic rotation group of order 4.

def c4_elements():
    return jnp.array([0.0, 0.5, 1.0, 1.5], dtype=jnp.float32) * jnp.pi


def c4_inverse(theta):
    return jnp.mod(-theta, 2.0 * jnp.pi)


def c4_left_action_on_R2(theta, grid):
    # grid: (2, k, k); channel 0 = row coordinate, channel 1 = col coordinate.
    rep = jnp.array([[jnp.cos(theta), -jnp.sin(theta)],
                     [jnp.sin(theta), jnp.cos(theta)]], dtype=jnp.float32)
    return jnp.einsum('ij,jkl->ikl', rep, grid)


def create_transformed_grid_R2(kernel_size):
    """LiftingKernelBase.create_transformed_grid_R2 -> (2, G, k, k)."""
    lin = jnp.linspace(-1.0, 1.0, kernel_size)
    g0, g1 = jnp.meshgrid(lin, lin, indexing='ij')
    grid_R2 = jnp.stack([g0, g1]).astype(jnp.float32)          # (2, k, k)
    inv_elems = c4_inverse(c4_elements())
    grids = jnp.stack(
        [c4_left_action_on_R2(inv_elems[g], grid_R2) for g in range(inv_elems.shape[0])],
        axis=1)                                                 # (2, G, k, k)
    return grids


# --------------------- bilinear re-sampling of the filters -------------------

def bilinear_interpolation(signal, grid):
    """signal: (C, H, W); grid: (2, Ho, Wo) in [-1, 1].
    grid[0] -> row coordinate, grid[1] -> col coordinate.
    align_corners=True, zero padding (matches torch grid_sample usage)."""
    C, H, W = signal.shape
    r = (grid[0] + 1.0) * 0.5 * (H - 1)
    c = (grid[1] + 1.0) * 0.5 * (W - 1)
    r0 = jnp.floor(r)
    c0 = jnp.floor(c)
    wr1 = r - r0
    wr0 = 1.0 - wr1
    wc1 = c - c0
    wc0 = 1.0 - wc1

    def corner(ri, ci, w):
        valid = (ri >= 0) & (ri <= H - 1) & (ci >= 0) & (ci <= W - 1)
        ri_i = jnp.clip(ri, 0, H - 1).astype(jnp.int32)
        ci_i = jnp.clip(ci, 0, W - 1).astype(jnp.int32)
        vals = signal[:, ri_i, ci_i]                            # (C, Ho, Wo)
        return vals * (w * valid.astype(signal.dtype))[None]

    return (corner(r0, c0, wr0 * wc0) + corner(r0, c0 + 1.0, wr0 * wc1) +
            corner(r0 + 1.0, c0, wr1 * wc0) + corner(r0 + 1.0, c0 + 1.0, wr1 * wc1))


def sample_lifting_kernels(weight, transformed_grid):
    """InterpolativeLiftingKernel.sample -> (OC, G, IC, k, k)."""
    OC, IC, K, _ = weight.shape
    G = transformed_grid.shape[1]
    flat = weight.reshape(OC * IC, K, K)
    tw = jnp.stack([bilinear_interpolation(flat, transformed_grid[:, g])
                    for g in range(G)])                         # (G, OC*IC, k, k)
    tw = tw.reshape(G, OC, IC, K, K)
    tw = jnp.transpose(tw, (1, 0, 2, 3, 4))                     # (OC, G, IC, k, k)
    return tw


# ------------------------------ Pallas conv2d --------------------------------

def _round_up(v, m):
    return ((v + m - 1) // m) * m


def _lifting_tap_matmul_kernel(w_ref, x_ref, o_ref, *, taps, tn, tn_halo):
    # w_ref: (K*K, CoutG, Cin)  bf16, resident across all grid steps
    # x_ref: (Cin, L_pad)       bf16, one flattened padded image (per-b, resident)
    # o_ref: (CoutG, tn)        lane-dense output tile (tn multiple of 128)
    start = pl.multiple_of(pl.program_id(1) * tn, 128)          # aligned dynamic offset
    window = x_ref[:, pl.ds(start, tn_halo)]                    # (Cin, tn_halo) one load
    acc = jnp.zeros(o_ref.shape, dtype=jnp.float32)
    # Static K*K unroll: each tap is a *static* lane shift inside the window,
    # accumulated as a small (CoutG,Cin)x(Cin,tn) MXU matmul in f32.
    for t, off in enumerate(taps):
        x_t = window[:, off:off + tn]                           # (Cin, tn)
        acc = acc + jnp.dot(w_ref[t], x_t, preferred_element_type=jnp.float32)
    o_ref[...] = acc.astype(o_ref.dtype)


def lifting_conv2d_pallas(x, conv_kernels, padding, *, tn=1024, out_dtype=jnp.float32):
    """Cross-correlation matching torch.nn.functional.conv2d (stride 1).
    x: (B, Cin, H, W); conv_kernels: (CoutG, Cin, K, K) -> (B, CoutG, Ho, Wo)."""
    B, Cin, H, W = x.shape
    CoutG, _, K, _ = conv_kernels.shape
    H_pad, W_pad = H + 2 * padding, W + 2 * padding
    H_out, W_out = H_pad - K + 1, W_pad - K + 1

    # "Anchored" output positions: every (i, j) with i in [0,H_out), j in [0,W_pad).
    # Columns j >= W_out are garbage (they mix rows) and are sliced off in XLA.
    N_a = H_out * W_pad

    tn = max(128, (tn // 128) * 128)
    tn = min(tn, _round_up(N_a, 128))
    n_tiles = pl.cdiv(N_a, tn)
    N_a_pad = n_tiles * tn

    halo = (K - 1) * W_pad + (K - 1)                   # max tap offset
    tn_halo = _round_up(tn + halo, 128)                # static window size per tile
    L_pad = (n_tiles - 1) * tn + tn_halo               # >= H_pad*W_pad, 128-aligned

    # bf16 BEFORE padding/flattening: halves the wrapper-side HBM traffic.
    x_flat = jnp.pad(x.astype(jnp.bfloat16),
                     ((0, 0), (0, 0), (padding, padding), (padding, padding)))
    x_flat = x_flat.reshape(B, Cin, H_pad * W_pad)
    x_flat = jnp.pad(x_flat, ((0, 0), (0, 0), (0, L_pad - H_pad * W_pad)))

    # Weights reordered tap-major: (CoutG, Cin, K, K) -> (K*K, CoutG, Cin), bf16.
    w_taps = jnp.transpose(conv_kernels, (2, 3, 0, 1)).reshape(K * K, CoutG, Cin)
    w_taps = w_taps.astype(jnp.bfloat16)

    taps = tuple(ki * W_pad + kj for ki in range(K) for kj in range(K))

    kernel = functools.partial(_lifting_tap_matmul_kernel,
                               taps=taps, tn=tn, tn_halo=tn_halo)

    out_itemsize = jnp.dtype(out_dtype).itemsize
    # Per-step VMEM: double-buffered image + weights + output tile, plus scratch slack.
    est_vmem = (2 * Cin * L_pad * 2            # x block, bf16, double-buffered
                + 2 * K * K * CoutG * Cin * 2  # weights, bf16, double-buffered
                + 2 * CoutG * tn * out_itemsize
                + 2 * Cin * tn_halo * 2 + CoutG * tn * 4)
    vmem_limit = int(min(max(2 * est_vmem + (8 << 20), 32 << 20), 48 << 20))

    flops = 2 * B * N_a_pad * CoutG * Cin * K * K
    bytes_accessed = (x_flat.size * 2) + (w_taps.size * 2) + (B * CoutG * N_a_pad * out_itemsize)

    out = pl.pallas_call(
        kernel,
        out_shape=jax.ShapeDtypeStruct((B, CoutG, N_a_pad), out_dtype),
        grid=(B, n_tiles),
        in_specs=[
            # weights: constant index_map -> stay resident, fetched once
            pl.BlockSpec((K * K, CoutG, Cin), lambda b, n: (0, 0, 0)),
            # one flattened image per batch element; index constant across n
            # so it is DMA'd from HBM exactly once per b
            pl.BlockSpec((None, Cin, L_pad), lambda b, n: (b, 0, 0)),
        ],
        out_specs=pl.BlockSpec((None, CoutG, tn), lambda b, n: (b, 0, n)),
        compiler_params=pltpu.CompilerParams(
            dimension_semantics=("parallel", "parallel"),   # B x tiles across v7x TCs
            vmem_limit_bytes=vmem_limit),
        cost_estimate=pl.CostEstimate(flops=flops, transcendentals=0,
                                      bytes_accessed=bytes_accessed),
    )(w_taps, x_flat)

    # Cheap XLA epilogue: drop padded anchors and the W-pad garbage columns.
    out = out[:, :, :H_out * W_pad].reshape(B, CoutG, H_out, W_pad)[:, :, :, :W_out]
    return out                                                   # (B, CoutG, Ho, Wo)


# ------------------------- LiftingConvolution.forward ------------------------

def lifting_convolution_forward(x, weight, transformed_grid, padding):
    OC, IC, K, _ = weight.shape
    G = transformed_grid.shape[1]
    conv_kernels = sample_lifting_kernels(weight, transformed_grid)
    conv_kernels = conv_kernels.reshape(OC * G, IC, K, K)
    y = lifting_conv2d_pallas(x, conv_kernels, padding)          # (B, OC*G, Ho, Wo)
    # Mirrors torch: x.view(-1, OC, G, x.shape[-1], x.shape[-2]).
    # NOTE: like the torch .view(), this relabels the trailing axes as
    # (W_out, H_out) without moving data; identical for square inputs.
    return y.reshape(-1, OC, G, y.shape[-1], y.shape[-2])


if __name__ == "__main__":
    B, IC, OC, K, H, W, padding = 2, 4, 8, 3, 16, 16, 1

    key = jax.random.PRNGKey(0)
    k_w, k_x = jax.random.split(key)

    # kaiming_uniform_(a=sqrt(5)) on (OC, IC, K, K): bound = gain/sqrt(fan_in)
    fan_in = IC * K * K
    gain = math.sqrt(2.0 / (1.0 + 5.0))
    bound = gain * math.sqrt(3.0 / fan_in)
    weight = jax.random.uniform(k_w, (OC, IC, K, K), jnp.float32, -bound, bound)
    x = jax.random.normal(k_x, (B, IC, H, W), dtype=jnp.float32)

    transformed_grid = create_transformed_grid_R2(K)             # (2, G, K, K)
    G = transformed_grid.shape[1]

    out = lifting_convolution_forward(x, weight, transformed_grid, padding)
    out = jax.block_until_ready(out)
    assert out.shape == (B, OC, G, H, W), out.shape

    # sanity check against XLA conv (operands bf16-rounded like the kernel's,
    # accumulation in f32 on both sides)
    ck = sample_lifting_kernels(weight, transformed_grid).reshape(OC * G, IC, K, K)
    x_b = x.astype(jnp.bfloat16).astype(jnp.float32)
    ck_b = ck.astype(jnp.bfloat16).astype(jnp.float32)
    ref = lax.conv_general_dilated(
        x_b, ck_b, window_strides=(1, 1),
        padding=[(padding, padding), (padding, padding)],
        dimension_numbers=('NCHW', 'OIHW', 'NCHW'))
    ref = ref.reshape(-1, OC, G, ref.shape[-1], ref.shape[-2])
    assert jnp.allclose(out, ref, atol=2e-3, rtol=2e-3), "mismatch vs XLA conv"

    print("KERNEL_OK")
</pallas_src>

<mosaic_0001>
module attributes {stable_mosaic.version = 11 : i64} {
  func.func @_lifting_tap_matmul_kernel(%arg0: i32, %arg1: i32, %arg2: memref<9x32x4xbf16, #tpu.memory_space<vmem>>, %arg3: memref<1x4x512xbf16, #tpu.memory_space<vmem>>, %arg4: memref<1x32x384xf32, #tpu.memory_space<vmem>>) attributes {dimension_semantics = [#tpu.dimension_semantics<parallel>, #tpu.dimension_semantics<parallel>], iteration_bounds = array<i64: 2, 1>, scalar_prefetch = 0 : i64, scratch_operands = 0 : i64, tpu.core_type = #tpu.core_type<tc>, window_params = [{pipeline_mode = #tpu.pipeline_mode<synchronous>, transform_indices = @transform_0, window_bounds = array<i64: 9, 32, 4>}, {transform_indices = @transform_1, window_bounds = array<i64: 1, 4, 512>}, {transform_indices = @transform_2, window_bounds = array<i64: 1, 32, 384>}]} {
    %c384_i32 = arith.constant 384 : i32
    %0 = arith.muli %arg1, %c384_i32 : i32
    %1 = tpu.assume_multiple %0, 128 : i32
    %c0 = arith.constant 0 : index
    %c0_0 = arith.constant 0 : index
    %2 = arith.index_cast %1 : i32 to index
    %3 = vector.load %arg3[%c0, %c0_0, %2] : memref<1x4x512xbf16, #tpu.memory_space<vmem>>, vector<1x4x512xbf16>
    %4 = vector.shape_cast %3 : vector<1x4x512xbf16> to vector<4x512xbf16>
    %cst = arith.constant 0.000000e+00 : f32
    %5 = vector.broadcast %cst : f32 to vector<32x384xf32>
    %6 = vector.extract_strided_slice %4 {offsets = [0, 0], sizes = [4, 384], strides = [1, 1]} : vector<4x512xbf16> to vector<4x384xbf16>
    %c0_1 = arith.constant 0 : index
    %c0_2 = arith.constant 0 : index
    %c0_3 = arith.constant 0 : index
    %7 = vector.load %arg2[%c0_1, %c0_2, %c0_3] : memref<9x32x4xbf16, #tpu.memory_space<vmem>>, vector<1x32x4xbf16>
    %8 = vector.shape_cast %7 : vector<1x32x4xbf16> to vector<32x4xbf16>
    %cst_4 = arith.constant dense<0.000000e+00> : vector<32x384xf32>
    %9 = tpu.matmul %8, %6, %cst_4 {dimension_numbers = #tpu.dot_dimension_numbers<[1], [0], [0], [1], [0, 0, 1, 1], [], []>} : vector<32x4xbf16>, vector<4x384xbf16>, vector<32x384xf32> -> vector<32x384xf32>
    %10 = arith.addf %5, %9 : vector<32x384xf32>
    %11 = vector.extract_strided_slice %4 {offsets = [0, 1], sizes = [4, 384], strides = [1, 1]} : vector<4x512xbf16> to vector<4x384xbf16>
    %c1 = arith.constant 1 : index
    %c0_5 = arith.constant 0 : index
    %c0_6 = arith.constant 0 : index
    %12 = vector.load %arg2[%c1, %c0_5, %c0_6] : memref<9x32x4xbf16, #tpu.memory_space<vmem>>, vector<1x32x4xbf16>
    %13 = vector.shape_cast %12 : vector<1x32x4xbf16> to vector<32x4xbf16>
    %cst_7 = arith.constant dense<0.000000e+00> : vector<32x384xf32>
    %14 = tpu.matmul %13, %11, %cst_7 {dimension_numbers = #tpu.dot_dimension_numbers<[1], [0], [0], [1], [0, 0, 1, 1], [], []>} : vector<32x4xbf16>, vector<4x384xbf16>, vector<32x384xf32> -> vector<32x384xf32>
    %15 = arith.addf %10, %14 : vector<32x384xf32>
    %16 = vector.extract_strided_slice %4 {offsets = [0, 2], sizes = [4, 384], strides = [1, 1]} : vector<4x512xbf16> to vector<4x384xbf16>
    %c2 = arith.constant 2 : index
    %c0_8 = arith.constant 0 : index
    %c0_9 = arith.constant 0 : index
    %17 = vector.load %arg2[%c2, %c0_8, %c0_9] : memref<9x32x4xbf16, #tpu.memory_space<vmem>>, vector<1x32x4xbf16>
    %18 = vector.shape_cast %17 : vector<1x32x4xbf16> to vector<32x4xbf16>
    %cst_10 = arith.constant dense<0.000000e+00> : vector<32x384xf32>
    %19 = tpu.matmul %18, %16, %cst_10 {dimension_numbers = #tpu.dot_dimension_numbers<[1], [0], [0], [1], [0, 0, 1, 1], [], []>} : vector<32x4xbf16>, vector<4x384xbf16>, vector<32x384xf32> -> vector<32x384xf32>
    %20 = arith.addf %15, %19 : vector<32x384xf32>
    %21 = vector.extract_strided_slice %4 {offsets = [0, 18], sizes = [4, 384], strides = [1, 1]} : vector<4x512xbf16> to vector<4x384xbf16>
    %c3 = arith.constant 3 : index
    %c0_11 = arith.constant 0 : index
    %c0_12 = arith.constant 0 : index
    %22 = vector.load %arg2[%c3, %c0_11, %c0_12] : memref<9x32x4xbf16, #tpu.memory_space<vmem>>, vector<1x32x4xbf16>
    %23 = vector.shape_cast %22 : vector<1x32x4xbf16> to vector<32x4xbf16>
    %cst_13 = arith.constant dense<0.000000e+00> : vector<32x384xf32>
    %24 = tpu.matmul %23, %21, %cst_13 {dimension_numbers = #tpu.dot_dimension_numbers<[1], [0], [0], [1], [0, 0, 1, 1], [], []>} : vector<32x4xbf16>, vector<4x384xbf16>, vector<32x384xf32> -> vector<32x384xf32>
    %25 = arith.addf %20, %24 : vector<32x384xf32>
    %26 = vector.extract_strided_slice %4 {offsets = [0, 19], sizes = [4, 384], strides = [1, 1]} : vector<4x512xbf16> to vector<4x384xbf16>
    %c4 = arith.constant 4 : index
    %c0_14 = arith.constant 0 : index
    %c0_15 = arith.constant 0 : index
    %27 = vector.load %arg2[%c4, %c0_14, %c0_15] : memref<9x32x4xbf16, #tpu.memory_space<vmem>>, vector<1x32x4xbf16>
    %28 = vector.shape_cast %27 : vector<1x32x4xbf16> to vector<32x4xbf16>
    %cst_16 = arith.constant dense<0.000000e+00> : vector<32x384xf32>
    %29 = tpu.matmul %28, %26, %cst_16 {dimension_numbers = #tpu.dot_dimension_numbers<[1], [0], [0], [1], [0, 0, 1, 1], [], []>} : vector<32x4xbf16>, vector<4x384xbf16>, vector<32x384xf32> -> vector<32x384xf32>
    %30 = arith.addf %25, %29 : vector<32x384xf32>
    %31 = vector.extract_strided_slice %4 {offsets = [0, 20], sizes = [4, 384], strides = [1, 1]} : vector<4x512xbf16> to vector<4x384xbf16>
    %c5 = arith.constant 5 : index
    %c0_17 = arith.constant 0 : index
    %c0_18 = arith.constant 0 : index
    %32 = vector.load %arg2[%c5, %c0_17, %c0_18] : memref<9x32x4xbf16, #tpu.memory_space<vmem>>, vector<1x32x4xbf16>
    %33 = vector.shape_cast %32 : vector<1x32x4xbf16> to vector<32x4xbf16>
    %cst_19 = arith.constant dense<0.000000e+00> : vector<32x384xf32>
    %34 = tpu.matmul %33, %31, %cst_19 {dimension_numbers = #tpu.dot_dimension_numbers<[1], [0], [0], [1], [0, 0, 1, 1], [], []>} : vector<32x4xbf16>, vector<4x384xbf16>, vector<32x384xf32> -> vector<32x384xf32>
    %35 = arith.addf %30, %34 : vector<32x384xf32>
    %36 = vector.extract_strided_slice %4 {offsets = [0, 36], sizes = [4, 384], strides = [1, 1]} : vector<4x512xbf16> to vector<4x384xbf16>
    %c6 = arith.constant 6 : index
    %c0_20 = arith.constant 0 : index
    %c0_21 = arith.constant 0 : index
    %37 = vector.load %arg2[%c6, %c0_20, %c0_21] : memref<9x32x4xbf16, #tpu.memory_space<vmem>>, vector<1x32x4xbf16>
    %38 = vector.shape_cast %37 : vector<1x32x4xbf16> to vector<32x4xbf16>
    %cst_22 = arith.constant dense<0.000000e+00> : vector<32x384xf32>
    %39 = tpu.matmul %38, %36, %cst_22 {dimension_numbers = #tpu.dot_dimension_numbers<[1], [0], [0], [1], [0, 0, 1, 1], [], []>} : vector<32x4xbf16>, vector<4x384xbf16>, vector<32x384xf32> -> vector<32x384xf32>
    %40 = arith.addf %35, %39 : vector<32x384xf32>
    %41 = vector.extract_strided_slice %4 {offsets = [0, 37], sizes = [4, 384], strides = [1, 1]} : vector<4x512xbf16> to vector<4x384xbf16>
    %c7 = arith.constant 7 : index
    %c0_23 = arith.constant 0 : index
    %c0_24 = arith.constant 0 : index
    %42 = vector.load %arg2[%c7, %c0_23, %c0_24] : memref<9x32x4xbf16, #tpu.memory_space<vmem>>, vector<1x32x4xbf16>
    %43 = vector.shape_cast %42 : vector<1x32x4xbf16> to vector<32x4xbf16>
    %cst_25 = arith.constant dense<0.000000e+00> : vector<32x384xf32>
    %44 = tpu.matmul %43, %41, %cst_25 {dimension_numbers = #tpu.dot_dimension_numbers<[1], [0], [0], [1], [0, 0, 1, 1], [], []>} : vector<32x4xbf16>, vector<4x384xbf16>, vector<32x384xf32> -> vector<32x384xf32>
    %45 = arith.addf %40, %44 : vector<32x384xf32>
    %46 = vector.extract_strided_slice %4 {offsets = [0, 38], sizes = [4, 384], strides = [1, 1]} : vector<4x512xbf16> to vector<4x384xbf16>
    %c8 = arith.constant 8 : index
    %c0_26 = arith.constant 0 : index
    %c0_27 = arith.constant 0 : index
    %47 = vector.load %arg2[%c8, %c0_26, %c0_27] : memref<9x32x4xbf16, #tpu.memory_space<vmem>>, vector<1x32x4xbf16>
    %48 = vector.shape_cast %47 : vector<1x32x4xbf16> to vector<32x4xbf16>
    %cst_28 = arith.constant dense<0.000000e+00> : vector<32x384xf32>
    %49 = tpu.matmul %48, %46, %cst_28 {dimension_numbers = #tpu.dot_dimension_numbers<[1], [0], [0], [1], [0, 0, 1, 1], [], []>} : vector<32x4xbf16>, vector<4x384xbf16>, vector<32x384xf32> -> vector<32x384xf32>
    %50 = arith.addf %45, %49 : vector<32x384xf32>
    %c0_29 = arith.constant 0 : index
    %c0_30 = arith.constant 0 : index
    %c0_31 = arith.constant 0 : index
    %51 = vector.load %arg4[%c0_29, %c0_30, %c0_31] : memref<1x32x384xf32, #tpu.memory_space<vmem>>, vector<1x32x384xf32>
    %52 = vector.shape_cast %51 : vector<1x32x384xf32> to vector<32x384xf32>
    %53 = vector.shape_cast %50 : vector<32x384xf32> to vector<1x32x384xf32>
    tpu.vector_store %arg4[%c0_29, %c0_30, %c0_31], %53 {strides = array<i32>} : memref<1x32x384xf32, #tpu.memory_space<vmem>>, vector<1x32x384xf32>,
    return
  }
  func.func @transform_0(%arg0: i32, %arg1: i32) -> (i32, i32, i32) {
    %c0_i32 = arith.constant 0 : i32
    %c0_i32_0 = arith.constant 0 : i32
    %c0_i32_1 = arith.constant 0 : i32
    %c0_i32_2 = arith.constant 0 : i32
    return %c0_i32, %c0_i32_0, %c0_i32_1 : i32, i32, i32
  }
  func.func @transform_1(%arg0: i32, %arg1: i32) -> (i32, i32, i32) {
    %c0_i32 = arith.constant 0 : i32
    %c0_i32_0 = arith.constant 0 : i32
    %c0_i32_1 = arith.constant 0 : i32
    return %arg0, %c0_i32, %c0_i32_0 : i32, i32, i32
  }
  func.func @transform_2(%arg0: i32, %arg1: i32) -> (i32, i32, i32) {
    %c0_i32 = arith.constant 0 : i32
    %c0_i32_0 = arith.constant 0 : i32
    return %arg0, %c0_i32, %arg1 : i32, i32, i32
  }
}

</mosaic_0001>

<bundles_post_ra>
// kernel: tpu_custom_call.1
= control target key start
LH: loop header
LB: loop body
LE: loop exit
PB: predicated region body
PF: predicated region fallthrough
CT: control target
= control target key end

     0   :  { %7 = vsyncpa [#allocation3], 0  ;;  %s2563_s0 = inlined_call_operand.vmem [shape: bf16[9,32,4], index: 0, kind: input, shape index: {}]   ;;  %s2564_s1 = inlined_call_operand.vmem [shape: bf16[2,4,512], index: 1, kind: input, shape index: {}]   ;;  %s2565_s2 = inlined_call_operand.hbm [shape: f32[2,32,384], index: 2, kind: output, shape index: {}]  }
   0x1   :  { %9 = vsyncpa [#allocation3 + $0x1], 0  ;;  %s2044_s9 = smov 0   ;;  %s2046_s10 = smov 0  }
   0x2   :  { %s2048_s11 = smov 0   ;;  %s2050_s12 = smov 0  }
   0x3   :  { %s2052_s13 = smov 0   ;;  %s2054_s14 = smov 0  }
   0x4 LB: > { %s1654_s15 = sadd.s32 4294967295, %s2014_s14   ;;  %s1655_s16 = sadd.s32 4294967294, %s2014_s14   ;;  %s2014_s14 = sphi %s2054_s14, %s15_s14   ;;  %s2010_s13 = sphi %s2052_s13, %s2608_s13   ;;  %s2006_s12 = sphi %s2050_s12, %s2607_s12   ;;  %s2002_s11 = sphi %s2048_s11, %s2606_s11   ;;  %s1998_s10 = sphi %s2046_s10, %s2605_s10   ;;  %s1994_s9 = sphi %s2044_s9, %s2604_s9  }
   0x5   : > { %s27_s17 = sadd.s32 1, %s2010_s13  ;;  %s83_s18 = sadd.s32 1, %s2002_s11 }
   0x6   : > { %p29_p0 = scmp.ge.s32.totalorder %s27_s17, 2  ;;  %p93_p1 = scmp.ne.s32.totalorder %s2002_s11, %s1998_s10 }
   0x7   : > { %p94_p2 = scmp.eq.s32.totalorder %s1654_s15, 1  ;;  %p99_p3 = scmp.ne.s32.totalorder %s1998_s10, %s1994_s9 }
   0x8   : > { %s2610_s17 = smov (%p29_p0, %s27_s17), 0  ;;  %p100_p5 = scmp.eq.s32.totalorder %s1655_s16, 1 }
   0x9   : > { %p2084_p4 = por %p94_p2, %p93_p1  ;;  %s78_s20 = ssub.s32 %s2010_s13, %s2610_s17 }
   0xa   : > { %p1658_p6 = scmp.ge.s32.totalorder %s2014_s14, 1  ;;  %p81_p7 = scmp.eq.s32.totalorder %s78_s20, 0 }
   0xb   : > { %p2091_p8 = por %p100_p5, %p99_p3  ;;  %p129_p9 = scmp.lt.s32.totalorder %s2014_s14, 3 }
   0xc   : > { %s2097_s22 = scalar_select %p81_p7, %s2002_s11, %s83_s18  }
   0xd   : > { %p130_p10 = pnand %p1658_p6, %p129_p9 }
   0xf   : > { %133 = sbr.rel (%p130_p10) target bundleno = 472 (0x1d8), region = 28 }
  0x14   : > { %p151_p11 = scmp.lt.s32.totalorder %s2006_s12, 1  ;;  %v188_v0 = vlaneseq  ;;  %v2016_v1 = vmov 1983009808   ;;  %v2104_v5 = vld [vmem:[%s2563_s0 + $0x10] sm:$0xff]   ;;  %v2017_v6 = vmov 0   ;;  %vm213_vm0 = vcmask 31744  }
  0x15   : > { %v186_v2 = vunpack.c.l.s4 %v2016_v1  ;;  %262 = vmatprep.mubr.bf16.mxu0 %v2017_v6  ;;  %1789 = vmatprep.mubr.msk.bf16.mxu1 %vm213_vm0, %v2104_v5  ;;  %s2018_s30 = smov 127   ;;  %s2019_s3 = smov 126   ;;  %vm209_vm1 = vcmask 1039360   ;;  %vm220_vm2 = vcmask 1041408   ;;  %v1921_v24 = vld [vmem:[%s2563_s0 + $0x18] sm:$0xff]   ;;  %vm482_vm3 = vcmask 1031168  }
  0x16   : > { %s152_s23 = scalar_select %p151_p11, %s2006_s12, 1  ;;  %v189_v3 = vshrl.u32 %v188_v0, 7  ;;  %v1922_v32 = vld [vmem:[%s2563_s0] sm:$0xff]   ;;  %vm638_vm4 = vcmask 900096   ;;  %v1923_v39 = vld [vmem:[%s2563_s0 + $0x8] sm:$0xff]   ;;  %vm794_vm5 = vcmask 891904  }
  0x17   : > { %v187_v4 = vunpack.c.0.s8 %v186_v2  ;;  %s2020_s4 = smov 110   ;;  %s2021_s5 = smov 109   ;;  %v1924_v44 = vld [vmem:[%s2563_s0 + $0x20] sm:$0xff]   ;;  %v1925_v49 = vld [vmem:[%s2563_s0 + $0x28] sm:$0xff]   ;;  %v1926_v55 = vld [vmem:[%s2563_s0 + $0x30] sm:$0xff]   ;;  %vm950_vm6 = vcmask 883712  }
  0x18   : > { %s1759_s26 = sshll.u32 %s152_s23, 3  ;;  %s2022_s6 = smov 108   ;;  %v1927_v62 = vld [vmem:[%s2563_s0 + $0x38] sm:$0xff]   ;;  %v1928_v2 = vld [vmem:[%s2563_s0 + $0x40] sm:$0xff]   ;;  %vm1106_vm7 = vcmask 752640   ;;  %vm1262_vm8 = vcmask 744448  }
  0x19   : > { %s155_s29 = scalar_lea.vmem %s2564_s1, %s1759_s26  ;;  %v190_v7 = vsub.s32 %v187_v4, %v189_v3  ;;  %s2023_s7 = smov 92   ;;  %vm1418_vm9 = vcmask 736256  }
  0x1a   : > { %v163_v8 = vld [vmem:[%s155_s29] sm:$0xff]  ;;  %s2024_s8 = smov 91   ;;  %s2025_s15 = smov 90  }
  0x1b   : > { %v2112_v9 = vrot.slane %v163_v8, %v190_v7  ;;  %v184_v10 = vcombine.high %v163_v8, %v163_v8  ;;  %v1929_v8 = vld [vmem:[%s2563_s0 + $0x48] sm:$0xff]   ;;  %s1851_s18 = smul.u32 1536, %s2006_s12  ;;  %s2026_s27 = smov [#allocation2]  }
  0x1c   : > { %s1942_s28 = sshll.u32 %s2026_s27, 4  ;;  %s1943_s28 = int_to_ptr.vmem [resolvable:$false] %s1942_s28 }
  0x1d   : > { %201 = vrot.lane.b32.xlu0 %v2112_v9, %s2018_s30  ;;  %v198_v11 = vrot.slane %v184_v10, %v190_v7  ;;  %v199_v12 = vcombine.high %v2112_v9, %v2112_v9  ;;  %v349_v26 = vsel %vm220_vm2, %v2112_v9, 0  ;;  %s2510_s12 = scalar_lea.hbm %s2565_s2, %s1851_s18  ;;  %s1944_s29 = scalar_lea.vmem %s1943_s28, 3072 }
  0x1f   : > { %205 = vrot.lane.b32.xlu1 %v198_v11, %s2018_s30  ;;  %v200_v13 = vcombine.high %v198_v11, %v198_v11  ;;  %v355_v23 = vsel %vm220_vm2, %v198_v11, 0 }
  0x21   : > { %203 = vrot.lane.b32.xlu0 %v199_v12, %s2018_s30 }
  0x23   : > { %207 = vrot.lane.b32.xlu1 %v200_v13, %s2018_s30 }
  0x25   : > { %474 = vrot.lane.b32.xlu0 %v2112_v9, %s2019_s3 }
  0x27   : > { %476 = vrot.lane.b32.xlu1 %v199_v12, %s2019_s3 }
  0x29   : > { %478 = vrot.lane.b32.xlu0 %v198_v11, %s2019_s3 }
  0x2b   : > { %480 = vrot.lane.b32.xlu1 %v200_v13, %s2019_s3 }
  0x2d   : > { %630 = vrot.lane.b32.xlu0 %v2112_v9, %s2020_s4 }
  0x2f   : > { %632 = vrot.lane.b32.xlu1 %v199_v12, %s2020_s4 }
  0x31   : > { %634 = vrot.lane.b32.xlu0 %v198_v11, %s2020_s4 }
  0x33   : > { %636 = vrot.lane.b32.xlu1 %v200_v13, %s2020_s4 }
  0x35   : > { %786 = vrot.lane.b32.xlu0 %v2112_v9, %s2021_s5 }
  0x37   : > { %788 = vrot.lane.b32.xlu1 %v199_v12, %s2021_s5 }
  0x39   : > { %790 = vrot.lane.b32.xlu0 %v198_v11, %s2021_s5 }
  0x3b   : > { %792 = vrot.lane.b32.xlu1 %v200_v13, %s2021_s5 }
  0x3d   : > { %942 = vrot.lane.b32.xlu0 %v2112_v9, %s2022_s6 }
  0x3f   : > { %944 = vrot.lane.b32.xlu1 %v199_v12, %s2022_s6 }
  0x41   : > { %946 = vrot.lane.b32.xlu0 %v198_v11, %s2022_s6 }
  0x43   : > { %948 = vrot.lane.b32.xlu1 %v200_v13, %s2022_s6 }
  0x45   : > { %1098 = vrot.lane.b32.xlu0 %v2112_v9, %s2023_s7 }
  0x47   : > { %1100 = vrot.lane.b32.xlu1 %v199_v12, %s2023_s7 }
  0x49   : > { %1102 = vrot.lane.b32.xlu0 %v198_v11, %s2023_s7 }
  0x4b   : > { %1104 = vrot.lane.b32.xlu1 %v200_v13, %s2023_s7 }
  0x4d   : > { %1254 = vrot.lane.b32.xlu0 %v2112_v9, %s2024_s8 }
  0x4f   : > { %1256 = vrot.lane.b32.xlu1 %v199_v12, %s2024_s8 }
  0x51   : > { %1258 = vrot.lane.b32.xlu0 %v198_v11, %s2024_s8 }
  0x53   : > { %1260 = vrot.lane.b32.xlu1 %v200_v13, %s2024_s8  ;;  %s148_s8 = sand.u32 1, %s1998_s10  }
  0x54   : > { %s2518_s25 = scalar_lea.sflag [#allocation3], %s148_s8 }
  0x55   : > { %1410 = vrot.lane.b32.xlu0 %v2112_v9, %s2025_s15 }
  0x57   : > { %1412 = vrot.lane.b32.xlu1 %v199_v12, %s2025_s15 }
  0x59   : > { %1414 = vrot.lane.b32.xlu0 %v198_v11, %s2025_s15 }
  0x5b   : > { %1416 = vrot.lane.b32.xlu1 %v200_v13, %s2025_s15  ;;  %s2454_s15 = smul.u32 96, %s148_s8 }
  0x5d   : > { %s2479_s16 = scalar_lea.vmem [#allocation2], %s2454_s15 }
  0x5e   : > { %s1579_s20 = sshll.u32 %s2479_s16, 4  ;;  %s2512_s20 = int_to_ptr.vmem [resolvable:$true] %s1579_s20 }
  0x5f   : > { %s1938_s26 = scalar_lea.vmem %s2512_s20, 1536  ;;  %p1945_p1 = scmp.lt.s32.totalorder %s2512_s20, %s1943_s28 }
  0x60   : > { %p1939_p12 = scmp.ne.s32.totalorder %s2512_s20, %s1938_s26  ;;  %p1946_p2 = scmp.lt.s32.totalorder %s1944_s29, %s1938_s26 }
  0x62   : > { %p1940_p13 = pnand %p1939_p12, %p2084_p4  ;;  %p1947_p3 = por %p1946_p2, %p1945_p1 }
  0x64   : > { %p1941_p0 = pneg %p1940_p13 }
  0x66   : > { %p1948_p5 = pnand %p1947_p3, %p1941_p0 }
  0x8f   : > { %v202_v14 = vpop.permute.xlu0 %201 }
  0x91   : > { %v206_v15 = vpop.permute.xlu1 %205 }
  0x93   : > { %v204_v16 = vpop.permute.xlu0 %203 }
  0x94   : > { %v211_v17 = vsel %vm209_vm1, %v204_v16, %v206_v15  ;;  %v210_v18 = vsel %vm209_vm1, %v202_v14, %v204_v16  ;;  %v1930_v14 = vld [vmem:[%s2563_s0 + $0x50] sm:$0xff]  }
  0x95   : > { %1667 = vmatprep.subr.msk.bf16.mxu0 %vm220_vm2, %v211_v17  ;;  %v208_v19 = vpop.permute.xlu1 %207  ;;  %v222_v20 = vsel %vm220_vm2, %v210_v18, 0 }
  0x96   : > { %245 = vmatpush1.bf16.msra.mxu0 %v222_v20  ;;  %v212_v21 = vsel %vm209_vm1, %v206_v15, %v208_v19 }
  0x97   : > { %1841 = vmatprep.subr.msk.bf16.mxu1 %vm220_vm2, %v212_v21  ;;  %v228_v22 = vsel %vm220_vm2, %v212_v21, 0  ;;  %1842 = vmatprep.subr.msk.bf16.mxu0 %vm220_vm2, %v198_v11  ;;  %v475_v25 = vpop.permute.xlu0 %474  ;;  %v1931_v21 = vld [vmem:[%s2563_s0 + $0x58] sm:$0xff]  }
  0x98   : > { %1788 = vmatpush3.bf16.msra.mxu1 %v228_v22 }
  0x99   : > { %1668 = vmatmul.mubr.msk.bf16.vlgmr.msra.gmra.mxu0 %vm213_vm0, %v2104_v5  ;;  %1674 = vmatprep.subr.msk.bf16.mxu1 %vm220_vm2, %v199_v12  ;;  %v477_v27 = vpop.permute.xlu1 %476 }
  0x9a   : > { %1794 = vmatpush3.bf16.msra.mxu0 %v355_v23  ;;  %272 = vmatprep.mubr.bf16.mxu0 %v2017_v6  ;;  %v483_v37 = vsel %vm482_vm3, %v475_v25, %v477_v27  ;;  %v1932_v25 = vld [vmem:[%s2563_s0 + $0x60] sm:$0xff]  }
  0x9b   : > { %1790 = vmatmul.mubr.msk.bf16.vlgmr.msra.gmra.mxu1 %vm213_vm0, %v1921_v24  ;;  %v479_v28 = vpop.permute.xlu0 %478  ;;  %v493_v41 = vsel %vm220_vm2, %v483_v37, 0 }
  0x9c   : > { %372 = vmatpush1.bf16.msra.mxu1 %v349_v26  ;;  %389 = vmatprep.mubr.bf16.mxu1 %v2017_v6  ;;  %v484_v29 = vsel %vm482_vm3, %v477_v27, %v479_v28 }
  0x9d   : > { %1685 = vmatprep.subr.msk.bf16.mxu0 %vm220_vm2, %v484_v29  ;;  %v481_v30 = vpop.permute.xlu1 %480 }
  0x9e   : > { %v485_v31 = vsel %vm482_vm3, %v479_v28, %v481_v30  ;;  %v1933_v30 = vld [vmem:[%s2563_s0 + $0x68] sm:$0xff]  }
  0x9f   : > { %v631_v33 = vpop.permute.xlu0 %630  ;;  %1843 = vmatprep.subr.msk.bf16.mxu1 %vm220_vm2, %v485_v31  ;;  %v499_v34 = vsel %vm220_vm2, %v485_v31, 0 }
  0xa1   : > { %1669 = vmatmul.mubr.msk.bf16.gmra.mxu0 %vm213_vm0, %v1921_v24  ;;  %v633_v35 = vpop.permute.xlu1 %632 }
  0xa2   : > { %1795 = vmatprep.mubr.msk.bf16.mxu0 %vm213_vm0, %v1922_v32  ;;  %v639_v47 = vsel %vm638_vm4, %v631_v33, %v633_v35 }
  0xa3   : > { %1675 = vmatmul.mubr.msk.bf16.vlgmr.msra.gmra.mxu1 %vm213_vm0, %v1922_v32  ;;  %v635_v36 = vpop.permute.xlu0 %634  ;;  %v649_v52 = vsel %vm220_vm2, %v639_v47, 0 }
  0xa4   : > { %399 = vmatprep.mubr.bf16.mxu1 %v2017_v6  ;;  %1800 = vmatpush3.bf16.msra.mxu1 %v499_v34  ;;  %v640_v38 = vsel %vm638_vm4, %v633_v35, %v635_v36  ;;  %v1934_v35 = vld [vmem:[%s2563_s0 + $0x70] sm:$0xff]  }
  0xa5   : > { %1696 = vmatprep.subr.msk.bf16.mxu1 %vm220_vm2, %v640_v38  ;;  %v637_v40 = vpop.permute.xlu1 %636  ;;  %v1935_v38 = vld [vmem:[%s2563_s0 + $0x78] sm:$0xff]  }
  0xa6   : > { %v641_v43 = vsel %vm638_vm4, %v635_v36, %v637_v40  ;;  %v1936_v40 = vld [vmem:[%s2563_s0 + $0x80] sm:$0xff]  }
  0xa7   : > { %v787_v42 = vpop.permute.xlu0 %786  ;;  %v655_v48 = vsel %vm220_vm2, %v641_v43, 0 }
  0xa9   : > { %1796 = vmatmul.mubr.msk.bf16.vlgmr.msra.gmra.mxu0 %vm213_vm0, %v1923_v39  ;;  %v789_v45 = vpop.permute.xlu1 %788 }
  0xaa   : > { %516 = vmatpush1.bf16.msra.mxu0 %v493_v41  ;;  %533 = vmatprep.mubr.bf16.mxu0 %v2017_v6  ;;  %v795_v61 = vsel %vm794_vm5, %v787_v42, %v789_v45  ;;  %v1937_v41 = vld [vmem:[%s2563_s0 + $0x88] sm:$0xff]  }
  0xab   : > { %1676 = vmatmul.mubr.msk.bf16.gmra.mxu1 %vm213_vm0, %v1923_v39  ;;  %1844 = vmatprep.subr.msk.bf16.mxu0 %vm220_vm2, %v641_v43  ;;  %v791_v46 = vpop.permute.xlu0 %790  ;;  %v805_v63 = vsel %vm220_vm2, %v795_v61, 0 }
  0xac   : > { %1801 = vmatprep.mubr.msk.bf16.mxu1 %vm213_vm0, %v1924_v44  ;;  %v796_v51 = vsel %vm794_vm5, %v789_v45, %v791_v46 }
  0xad   : > { %v793_v50 = vpop.permute.xlu1 %792 }
  0xae   : > { %v797_v54 = vsel %vm794_vm5, %v791_v46, %v793_v50 }
  0xaf   : > { %v943_v53 = vpop.permute.xlu0 %942  ;;  %v811_v58 = vsel %vm220_vm2, %v797_v54, 0 }
  0xb1   : > { %1686 = vmatmul.mubr.msk.bf16.vlgmr.msra.gmra.mxu0 %vm213_vm0, %v1924_v44  ;;  %v945_v57 = vpop.permute.xlu1 %944 }
  0xb2   : > { %1806 = vmatpush3.bf16.msra.mxu0 %v655_v48  ;;  %543 = vmatprep.mubr.bf16.mxu0 %v2017_v6  ;;  %v951_v5 = vsel %vm950_vm6, %v943_v53, %v945_v57 }
  0xb3   : > { %1802 = vmatmul.mubr.msk.bf16.vlgmr.msra.gmra.mxu1 %vm213_vm0, %v1925_v49  ;;  %1707 = vmatprep.subr.msk.bf16.mxu0 %vm220_vm2, %v796_v51  ;;  %v947_v56 = vpop.permute.xlu0 %946  ;;  %v961_v11 = vsel %vm220_vm2, %v951_v5, 0 }
  0xb4   : > { %672 = vmatpush1.bf16.msra.mxu1 %v649_v52  ;;  %689 = vmatprep.mubr.bf16.mxu1 %v2017_v6  ;;  %v952_v59 = vsel %vm950_vm6, %v945_v57, %v947_v56 }
  0xb5   : > { %1845 = vmatprep.subr.msk.bf16.mxu1 %vm220_vm2, %v797_v54  ;;  %v949_v60 = vpop.permute.xlu1 %948 }
  0xb6   : > { %v953_v1 = vsel %vm950_vm6, %v947_v56, %v949_v60 }
  0xb7   : > { %v1099_v0 = vpop.permute.xlu0 %1098  ;;  %v967_v7 = vsel %vm220_vm2, %v953_v1, 0 }
  0xb9   : > { %1687 = vmatmul.mubr.msk.bf16.gmra.mxu0 %vm213_vm0, %v1925_v49  ;;  %v1101_v3 = vpop.permute.xlu1 %1100 }
  0xba   : > { %1807 = vmatprep.mubr.msk.bf16.mxu0 %vm213_vm0, %v1926_v55  ;;  %v1107_v20 = vsel %vm1106_vm7, %v1099_v0, %v1101_v3 }
  0xbb   : > { %1697 = vmatmul.mubr.msk.bf16.vlgmr.msra.gmra.mxu1 %vm213_vm0, %v1926_v55  ;;  %v1103_v4 = vpop.permute.xlu0 %1102  ;;  %v1117_v22 = vsel %vm220_vm2, %v1107_v20, 0 }
  0xbc   : > { %699 = vmatprep.mubr.bf16.mxu1 %v2017_v6  ;;  %1812 = vmatpush3.bf16.msra.mxu1 %v811_v58  ;;  %v1108_v10 = vsel %vm1106_vm7, %v1101_v3, %v1103_v4 }
  0xbd   : > { %1718 = vmatprep.subr.msk.bf16.mxu1 %vm220_vm2, %v952_v59  ;;  %v1105_v9 = vpop.permute.xlu1 %1104 }
  0xbe   : > { %v1109_v13 = vsel %vm1106_vm7, %v1103_v4, %v1105_v9 }
  0xbf   : > { %v1255_v12 = vpop.permute.xlu0 %1254  ;;  %v1123_v17 = vsel %vm220_vm2, %v1109_v13, 0 }
  0xc1   : > { %1808 = vmatmul.mubr.msk.bf16.vlgmr.msra.gmra.mxu0 %vm213_vm0, %v1927_v62  ;;  %v1257_v16 = vpop.permute.xlu1 %1256 }
  0xc2   : > { %828 = vmatpush1.bf16.msra.mxu0 %v805_v63  ;;  %845 = vmatprep.mubr.bf16.mxu0 %v2017_v6  ;;  %v1263_v28 = vsel %vm1262_vm8, %v1255_v12, %v1257_v16 }
  0xc3   : > { %1698 = vmatmul.mubr.msk.bf16.gmra.mxu1 %vm213_vm0, %v1927_v62  ;;  %1846 = vmatprep.subr.msk.bf16.mxu0 %vm220_vm2, %v953_v1  ;;  %v1259_v15 = vpop.permute.xlu0 %1258  ;;  %v1273_v33 = vsel %vm220_vm2, %v1263_v28, 0 }
  0xc4   : > { %1813 = vmatprep.mubr.msk.bf16.mxu1 %vm213_vm0, %v1928_v2  ;;  %v1264_v18 = vsel %vm1262_vm8, %v1257_v16, %v1259_v15 }
  0xc5   : > { %v1261_v19 = vpop.permute.xlu1 %1260 }
  0xc6   : > { %v1265_v24 = vsel %vm1262_vm8, %v1259_v15, %v1261_v19 }
  0xc7   : > { %v1411_v23 = vpop.permute.xlu0 %1410  ;;  %v1279_v29 = vsel %vm220_vm2, %v1265_v24, 0 }
  0xc9   : > { %1708 = vmatmul.mubr.msk.bf16.vlgmr.msra.gmra.mxu0 %vm213_vm0, %v1928_v2  ;;  %v1413_v26 = vpop.permute.xlu1 %1412 }
  0xca   : > { %1818 = vmatpush3.bf16.msra.mxu0 %v967_v7  ;;  %855 = vmatprep.mubr.bf16.mxu0 %v2017_v6  ;;  %v1419_v37 = vsel %vm1418_vm9, %v1411_v23, %v1413_v26 }
  0xcb   : > { %1814 = vmatmul.mubr.msk.bf16.vlgmr.msra.gmra.mxu1 %vm213_vm0, %v1929_v8  ;;  %1729 = vmatprep.subr.msk.bf16.mxu0 %vm220_vm2, %v1108_v10  ;;  %v1415_v27 = vpop.permute.xlu0 %1414  ;;  %v1429_v39 = vsel %vm220_vm2, %v1419_v37, 0 }
  0xcc   : > { %984 = vmatpush1.bf16.msra.mxu1 %v961_v11  ;;  %1001 = vmatprep.mubr.bf16.mxu1 %v2017_v6  ;;  %v1420_v32 = vsel %vm1418_vm9, %v1413_v26, %v1415_v27 }
  0xcd   : > { %1847 = vmatprep.subr.msk.bf16.mxu1 %vm220_vm2, %v1109_v13  ;;  %v1417_v31 = vpop.permute.xlu1 %1416 }
  0xce   : > { %v1421_v34 = vsel %vm1418_vm9, %v1415_v27, %v1417_v31 }
  0xcf   : > { %v1435_v36 = vsel %vm220_vm2, %v1421_v34, 0 }
  0xd1   : > { %1709 = vmatmul.mubr.msk.bf16.gmra.mxu0 %vm213_vm0, %v1929_v8 }
  0xd2   : > { %1819 = vmatprep.mubr.msk.bf16.mxu0 %vm213_vm0, %v1930_v14 }
  0xd3   : > { %1719 = vmatmul.mubr.msk.bf16.vlgmr.msra.gmra.mxu1 %vm213_vm0, %v1930_v14 }
  0xd4   : > { %1011 = vmatprep.mubr.bf16.mxu1 %v2017_v6  ;;  %1824 = vmatpush3.bf16.msra.mxu1 %v1123_v17 }
  0xd5   : > { %1740 = vmatprep.subr.msk.bf16.mxu1 %vm220_vm2, %v1264_v18 }
  0xd9   : > { %1820 = vmatmul.mubr.msk.bf16.vlgmr.msra.gmra.mxu0 %vm213_vm0, %v1931_v21 }
  0xda   : > { %1140 = vmatpush1.bf16.msra.mxu0 %v1117_v22  ;;  %1157 = vmatprep.mubr.bf16.mxu0 %v2017_v6 }
  0xdb   : > { %1720 = vmatmul.mubr.msk.bf16.gmra.mxu1 %vm213_vm0, %v1931_v21  ;;  %1848 = vmatprep.subr.msk.bf16.mxu0 %vm220_vm2, %v1265_v24 }
  0xdc   : > { %1825 = vmatprep.mubr.msk.bf16.mxu1 %vm213_vm0, %v1932_v25 }
  0xe1   : > { %1730 = vmatmul.mubr.msk.bf16.vlgmr.msra.gmra.mxu0 %vm213_vm0, %v1932_v25 }
  0xe2   : > { %1830 = vmatpush3.bf16.msra.mxu0 %v1279_v29  ;;  %1167 = vmatprep.mubr.bf16.mxu0 %v2017_v6 }
  0xe3   : > { %1826 = vmatmul.mubr.msk.bf16.vlgmr.msra.gmra.mxu1 %vm213_vm0, %v1933_v30  ;;  %1751 = vmatprep.subr.msk.bf16.mxu0 %vm220_vm2, %v1420_v32 }
  0xe4   : > { %1296 = vmatpush1.bf16.msra.mxu1 %v1273_v33  ;;  %1313 = vmatprep.mubr.bf16.mxu1 %v2017_v6 }
  0xe5   : > { %1849 = vmatprep.subr.msk.bf16.mxu1 %vm220_vm2, %v1421_v34 }
  0xe9   : > { %1731 = vmatmul.mubr.msk.bf16.gmra.mxu0 %vm213_vm0, %v1933_v30 }
  0xea   : > { %1831 = vmatprep.mubr.msk.bf16.mxu0 %vm213_vm0, %v1934_v35 }
  0xeb   : > { %1741 = vmatmul.mubr.msk.bf16.vlgmr.msra.gmra.mxu1 %vm213_vm0, %v1934_v35 }
  0xec   : > { %1323 = vmatprep.mubr.bf16.mxu1 %v2017_v6  ;;  %1836 = vmatpush3.bf16.msra.mxu1 %v1435_v36 }
  0xf1   : > { %1832 = vmatmul.mubr.msk.bf16.vlgmr.msra.gmra.mxu0 %vm213_vm0, %v1935_v38 }
  0xf2   : > { %1452 = vmatpush1.bf16.msra.mxu0 %v1429_v39  ;;  %1469 = vmatprep.mubr.bf16.mxu0 %v2017_v6 }
  0xf3   : > { %1742 = vmatmul.mubr.msk.bf16.gmra.mxu1 %vm213_vm0, %v1935_v38 }
  0xf4   : > { %1837 = vmatprep.mubr.msk.bf16.mxu1 %vm213_vm0, %v1936_v40 }
  0xf9   : > { %1752 = vmatmul.mubr.msk.bf16.vlgmr.msra.gmra.mxu0 %vm213_vm0, %v1936_v40 }
  0xfa   : > { %1479 = vmatprep.mubr.bf16.mxu0 %v2017_v6 }
  0xfb   : > { %1838 = vmatmul.mubr.msk.bf16.vlgmr.msra.gmra.mxu1 %vm213_vm0, %v1937_v41 }
 0x101   : > { %1753 = vmatmul.mubr.msk.bf16.gmra.mxu0 %vm213_vm0, %v1937_v41 }
 0x159   : > { %v264_v42 = vpop.f32.mrf.mxu0 }
 0x15b   : > { %v266_v43 = vpop.f32.mrf.mxu0  ;;  %v1791_v44 = vpop.f32.mrf.mxu1 }
 0x15d   : > { %v268_v45 = vpop.f32.mrf.mxu0  ;;  %v317_v46 = vpop.f32.mrf.mxu1 }
 0x15f   : > { %v270_v47 = vpop.f32.mrf.mxu0  ;;  %v1792_v48 = vpop.f32.mrf.mxu1 }
 0x161   : > { %v274_v49 = vpop.f32.mrf.mxu0  ;;  %v320_v50 = vpop.f32.mrf.mxu1 }
 0x163   : > { %v276_v51 = vpop.f32.mrf.mxu0  ;;  %v391_v52 = vpop.f32.mrf.mxu1 }
 0x164   : > { %v2286_v53 = vadd.f32 %v391_v52, %v264_v42 }
 0x165   : > { %v278_v54 = vpop.f32.mrf.mxu0  ;;  %v393_v55 = vpop.f32.mrf.mxu1 }
 0x166   : > { %v2288_v6 = vadd.f32 %v393_v55, %v266_v43 }
 0x167   : > { %v280_v56 = vpop.f32.mrf.mxu0  ;;  %v395_v57 = vpop.f32.mrf.mxu1 }
 0x168   : > { %v2290_v58 = vadd.f32 %v395_v57, %v268_v45 }
 0x169   : > { %v397_v59 = vpop.f32.mrf.mxu1  ;;  %v1797_v60 = vpop.f32.mrf.mxu0 }
 0x16a   : > { %v2292_v61 = vadd.f32 %v397_v59, %v270_v47  ;;  %v2294_v62 = vadd.f32 %v1797_v60, %v1791_v44 }
 0x16b   : > { %v401_v63 = vpop.f32.mrf.mxu1  ;;  %v444_v0 = vpop.f32.mrf.mxu0 }
 0x16c   : > { %v2296_v1 = vadd.f32 %v401_v63, %v274_v49  ;;  %v2298_v2 = vadd.f32 %v444_v0, %v317_v46 }
 0x16d   : > { %v403_v3 = vpop.f32.mrf.mxu1  ;;  %v1798_v4 = vpop.f32.mrf.mxu0 }
 0x16e   : > { %v2300_v5 = vadd.f32 %v403_v3, %v276_v51  ;;  %v2302_v7 = vadd.f32 %v1798_v4, %v1792_v48 }
 0x16f   : > { %v405_v8 = vpop.f32.mrf.mxu1  ;;  %v447_v9 = vpop.f32.mrf.mxu0 }
 0x170   : > { %v2304_v10 = vadd.f32 %v405_v8, %v278_v54  ;;  %v2306_v11 = vadd.f32 %v447_v9, %v320_v50 }
 0x171   : > { %v407_v12 = vpop.f32.mrf.mxu1  ;;  %v535_v13 = vpop.f32.mrf.mxu0 }
 0x172   : > { %v2308_v14 = vadd.f32 %v407_v12, %v280_v56 }
 0x173   : > { %v537_v15 = vpop.f32.mrf.mxu0  ;;  %v1803_v16 = vpop.f32.mrf.mxu1 }
 0x175   : > { %v539_v17 = vpop.f32.mrf.mxu0  ;;  %v588_v18 = vpop.f32.mrf.mxu1 }
 0x177   : > { %v541_v19 = vpop.f32.mrf.mxu0  ;;  %v2310_v20 = vpop.f32.mrf.mxu1 }
 0x179   : > { %v2312_v21 = vpop.f32.mrf.mxu0  ;;  %v2314_v22 = vpop.f32.mrf.mxu1 }
 0x17b   : > { %v2316_v23 = vpop.f32.mrf.mxu0  ;;  %v691_v24 = vpop.f32.mrf.mxu1 }
 0x17d   : > { %v2318_v25 = vpop.f32.mrf.mxu0  ;;  %v2320_v26 = vpop.f32.mrf.mxu1 }
 0x17f   : > { %v2322_v27 = vpop.f32.mrf.mxu0  ;;  %v2324_v28 = vpop.f32.mrf.mxu1 }
 0x181   : > { %v2326_v29 = vpop.f32.mrf.mxu1  ;;  %v2328_v30 = vpop.f32.mrf.mxu0 }
 0x183   : > { %v2330_v31 = vpop.f32.mrf.mxu1  ;;  %v2332_v32 = vpop.f32.mrf.mxu0 }
 0x185   : > { %v2334_v33 = vpop.f32.mrf.mxu1  ;;  %v2336_v34 = vpop.f32.mrf.mxu0 }
 0x187   : > { %v2338_v35 = vpop.f32.mrf.mxu1  ;;  %v2340_v36 = vpop.f32.mrf.mxu0 }
 0x189   : > { %v2342_v37 = vpop.f32.mrf.mxu1  ;;  %v847_v38 = vpop.f32.mrf.mxu0 }
 0x18b   : > { %v2344_v39 = vpop.f32.mrf.mxu0  ;;  %v2346_v40 = vpop.f32.mrf.mxu1 }
 0x18d   : > { %v2348_v41 = vpop.f32.mrf.mxu0  ;;  %v2350_v42 = vpop.f32.mrf.mxu1 }
 0x18f   : > { %v2352_v43 = vpop.f32.mrf.mxu0  ;;  %v2354_v44 = vpop.f32.mrf.mxu1 }
 0x191   : > { %v2356_v45 = vpop.f32.mrf.mxu0  ;;  %v2358_v46 = vpop.f32.mrf.mxu1 }
 0x193   : > { %v2360_v47 = vpop.f32.mrf.mxu0  ;;  %v1003_v48 = vpop.f32.mrf.mxu1 }
 0x194   : > { %2568 = vst [vmem:[#allocation5_spill] sm:$0xff] %v2360_v47  ;;  %v603_v47 = vadd.f32 %v535_v13, %v2286_v53  ;;  %v609_v53 = vadd.f32 %v2312_v21, %v2296_v1  ;;  %v613_v13 = vadd.f32 %v2322_v27, %v2308_v14 }
 0x195   : > { %v2362_v49 = vpop.f32.mrf.mxu0  ;;  %v2364_v50 = vpop.f32.mrf.mxu1 }
 0x196   : > { %2569 = vst [vmem:[#allocation6_spill] sm:$0xff] %v2362_v49 }
 0x197   : > { %v2366_v51 = vpop.f32.mrf.mxu0  ;;  %v2368_v52 = vpop.f32.mrf.mxu1 }
 0x198   : > { %2570 = vst [vmem:[#allocation7_spill] sm:$0xff] %v2366_v51 }
 0x199   : > { %v2370_v54 = vpop.f32.mrf.mxu1  ;;  %v2372_v55 = vpop.f32.mrf.mxu0 }
 0x19a   : > { %2571 = vst [vmem:[#allocation8_spill] sm:$0xff] %v2370_v54 }
 0x19b   : > { %v2374_v56 = vpop.f32.mrf.mxu1  ;;  %v2376_v57 = vpop.f32.mrf.mxu0 }
 0x19c   : > { %2572 = vst [vmem:[#allocation9_spill] sm:$0xff] %v2374_v56 }
 0x19d   : > { %v2378_v59 = vpop.f32.mrf.mxu1  ;;  %v2380_v60 = vpop.f32.mrf.mxu0 }
 0x19e   : > { %2573 = vst [vmem:[#allocation10_spill] sm:$0xff] %v2378_v59  ;;  %2574 = vst [vmem:[#allocation11_spill] sm:$0xff] %v2380_v60 }
 0x19f   : > { %v2382_v63 = vpop.f32.mrf.mxu1  ;;  %v2384_v0 = vpop.f32.mrf.mxu0 }
 0x1a0   : > { %2575 = vst [vmem:[#allocation12_spill] sm:$0xff] %v2382_v63  ;;  %2576 = vst [vmem:[#allocation13_spill] sm:$0xff] %v2384_v0 }
 0x1a1   : > { %v2386_v3 = vpop.f32.mrf.mxu1  ;;  %v1159_v4 = vpop.f32.mrf.mxu0 }
 0x1a2   : > { %2577 = vst [vmem:[#allocation14_spill] sm:$0xff] %v2386_v3 }
 0x1a3   : > { %v2388_v8 = vpop.f32.mrf.mxu0  ;;  %v2390_v9 = vpop.f32.mrf.mxu1 }
 0x1a4   : > { %2578 = vst [vmem:[#allocation15_spill] sm:$0xff] %v2390_v9 }
 0x1a5   : > { %v2392_v12 = vpop.f32.mrf.mxu0  ;;  %v2394_v51 = vpop.f32.mrf.mxu1 }
 0x1a6   : > { %2579 = vst [vmem:[#allocation16_spill] sm:$0xff] %v2392_v12  ;;  %2580 = vst [vmem:[#allocation17_spill] sm:$0xff] %v2394_v51  ;;  %v604_v12 = vadd.f32 %v537_v15, %v2288_v6  ;;  %v611_v51 = vadd.f32 %v1803_v16, %v2294_v62  ;;  %v608_v6 = vadd.f32 %v2314_v22, %v2306_v11 }
 0x1a7   : > { %v2396_v49 = vpop.f32.mrf.mxu0  ;;  %v2398_v59 = vpop.f32.mrf.mxu1  ;;  %v759_v62 = vadd.f32 %v691_v24, %v603_v47 }
 0x1a8   : > { %2581 = vst [vmem:[#allocation18_spill] sm:$0xff] %v2396_v49  ;;  %2582 = vst [vmem:[#allocation19_spill] sm:$0xff] %v2398_v59  ;;  %v606_v49 = vadd.f32 %v539_v17, %v2290_v58  ;;  %v605_v59 = vadd.f32 %v588_v18, %v2298_v2  ;;  %v610_v58 = vadd.f32 %v2316_v23, %v2300_v5 }
 0x1a9   : > { %v2400_v56 = vpop.f32.mrf.mxu0  ;;  %v2402_v63 = vpop.f32.mrf.mxu1  ;;  %v760_v2 = vadd.f32 %v2320_v26, %v604_v12  ;;  %v767_v11 = vadd.f32 %v2328_v30, %v611_v51  ;;  %v915_v17 = vadd.f32 %v847_v38, %v759_v62  ;;  %v765_v5 = vadd.f32 %v2330_v31, %v609_v53  ;;  %v2588_v51 = vld [vmem:[#allocation8_spill] sm:$0xff]  ;;  %v2593_v62 = vld [vmem:[#allocation13_spill] sm:$0xff] }
 0x1aa   : > { %2583 = vst [vmem:[#allocation20_spill] sm:$0xff] %v2400_v56  ;;  %v607_v56 = vadd.f32 %v541_v19, %v2292_v61  ;;  %v612_v61 = vadd.f32 %v2318_v25, %v2304_v10  ;;  %v762_v1 = vadd.f32 %v2324_v28, %v606_v49  ;;  %v761_v10 = vadd.f32 %v2332_v32, %v605_v59  ;;  %v2587_v49 = vld [vmem:[#allocation5_spill] sm:$0xff] }
 0x1ab   : > { %v2404_v0 = vpop.f32.mrf.mxu0  ;;  %v1315_v3 = vpop.f32.mrf.mxu1  ;;  %v766_v18 = vadd.f32 %v2334_v33, %v610_v58  ;;  %v916_v22 = vadd.f32 %v2344_v39, %v760_v2  ;;  %v923_v23 = vadd.f32 %v2346_v40, %v767_v11  ;;  %v1071_v24 = vadd.f32 %v1003_v48, %v915_v17 }
 0x1ac   : > { %2584 = vst [vmem:[#allocation21_spill] sm:$0xff] %v2404_v0  ;;  %v763_v16 = vadd.f32 %v2326_v29, %v607_v56  ;;  %v768_v21 = vadd.f32 %v2338_v35, %v612_v61  ;;  %v764_v25 = vadd.f32 %v2340_v36, %v608_v6  ;;  %v769_v26 = vadd.f32 %v2342_v37, %v613_v13 }
 0x1ad   : > { %v2406_v60 = vpop.f32.mrf.mxu0  ;;  %v1317_v54 = vpop.f32.mrf.mxu1  ;;  %v918_v27 = vadd.f32 %v2348_v41, %v762_v1  ;;  %v917_v28 = vadd.f32 %v2350_v42, %v761_v10  ;;  %v1072_v32 = vadd.f32 %v2364_v50, %v916_v22  ;;  %v1079_v33 = vadd.f32 %v2372_v55, %v923_v23  ;;  %v2589_v55 = vld [vmem:[#allocation11_spill] sm:$0xff]  ;;  %v2590_v56 = vld [vmem:[#allocation16_spill] sm:$0xff] }
 0x1ae   : > { %2585 = vst [vmem:[#allocation22_spill] sm:$0xff] %v2406_v60  ;;  %v614_v60 = vadd.f32 %v2310_v20, %v2302_v7  ;;  %v919_v31 = vadd.f32 %v2352_v43, %v763_v16  ;;  %v921_v36 = vadd.f32 %v2356_v45, %v765_v5  ;;  %v920_v37 = vadd.f32 %v2358_v46, %v764_v25  ;;  %v2586_v43 = vld [vmem:[#allocation15_spill] sm:$0xff]  ;;  %v2596_v5 = vld [vmem:[#allocation6_spill] sm:$0xff] }
 0x1af   : > { %v2414_v9 = vpop.f32.mrf.mxu0  ;;  %v2416_v0 = vpop.f32.mrf.mxu1  ;;  %v1074_v38 = vadd.f32 %v2368_v52, %v918_v27  ;;  %v1073_v41 = vadd.f32 %v2376_v57, %v917_v28  ;;  %v1228_v42 = vadd.f32 %v2388_v8, %v1072_v32  ;;  %v1235_v47 = vadd.f32 %v2586_v43, %v1079_v33  ;;  %v2592_v8 = vld [vmem:[#allocation9_spill] sm:$0xff]  ;;  %v2594_v58 = vld [vmem:[#allocation18_spill] sm:$0xff]  ;;  %v2595_v2 = vld [vmem:[#allocation19_spill] sm:$0xff] }
 0x1b0   : > { %v770_v14 = vadd.f32 %v2336_v34, %v614_v60  ;;  %v1227_v34 = vadd.f32 %v1159_v4, %v1071_v24  ;;  %v922_v50 = vadd.f32 %v2587_v49, %v766_v18  ;;  %v2591_v60 = vld [vmem:[#allocation17_spill] sm:$0xff]  ;;  %v1077_v6 = vadd.f32 %v2592_v8, %v921_v36  ;;  %v2597_v18 = vld [vmem:[#allocation10_spill] sm:$0xff]  ;;  %v2599_v32 = vld [vmem:[#allocation7_spill] sm:$0xff] }
 0x1b1   : > { %v2431_v15 = vpop.f32.mrf.mxu1  ;;  %v1833_v7 = vpop.f32.mrf.mxu0  ;;  %v1230_v46 = vadd.f32 %v2590_v56, %v1074_v38  ;;  %v1229_v4 = vadd.f32 %v2591_v60, %v1073_v41  ;;  %v1384_v12 = vadd.f32 %v1317_v54, %v1228_v42  ;;  %v924_v10 = vadd.f32 %v2596_v5, %v768_v21  ;;  %v2598_v22 = vld [vmem:[#allocation20_spill] sm:$0xff]  ;;  %v2602_v42 = vld [vmem:[#allocation14_spill] sm:$0xff] }
 0x1b2   : > { %v926_v35 = vadd.f32 %v2354_v44, %v770_v14  ;;  %v1383_v48 = vadd.f32 %v1315_v3, %v1227_v34  ;;  %v1075_v44 = vadd.f32 %v2588_v51, %v919_v31  ;;  %v1391_v57 = vadd.f32 %v1833_v7, %v1235_v47  ;;  %v2600_v21 = vld [vmem:[#allocation12_spill] sm:$0xff] }
 0x1b3   : > { %v2441_v19 = vpop.f32.mrf.mxu1  ;;  %v1368_v20 = vpop.f32.mrf.mxu0  ;;  %v1076_v3 = vadd.f32 %v2593_v62, %v920_v37  ;;  %v1386_v11 = vadd.f32 %v2416_v0, %v1230_v46  ;;  %v1078_v14 = vadd.f32 %v2597_v18, %v922_v50  ;;  %v1233_v23 = vadd.f32 %v2598_v22, %v1077_v6 }
 0x1b4   : > { %v1082_v45 = vadd.f32 %v2589_v55, %v926_v35  ;;  %v1231_v61 = vadd.f32 %v2594_v58, %v1075_v44  ;;  %v1385_v17 = vadd.f32 %v1368_v20, %v1229_v4  ;;  %v925_v33 = vadd.f32 %v2599_v32, %v769_v26  ;;  %v2601_v35 = vld [vmem:[#allocation21_spill] sm:$0xff] }
 0x1b5   : > { %v2450_v29 = vpop.f32.mrf.mxu1  ;;  %v1834_v30 = vpop.f32.mrf.mxu0  ;;  %v1232_v24 = vadd.f32 %v2402_v63, %v1076_v3  ;;  %v1080_v34 = vadd.f32 %v2600_v21, %v924_v10  ;;  %v1234_v36 = vadd.f32 %v2601_v35, %v1078_v14  ;;  %v1389_v38 = vadd.f32 %v2441_v19, %v1233_v23 }
 0x1b6   : > { %v1238_v13 = vadd.f32 %v2595_v2, %v1082_v45  ;;  %v1387_v20 = vadd.f32 %v2431_v15, %v1231_v61  ;;  %v1081_v26 = vadd.f32 %v2602_v42, %v925_v33 }
 0x1b7   : > { %v2463_v39 = vpop.f32.mrf.mxu1  ;;  %v1371_v40 = vpop.f32.mrf.mxu0  ;;  %v1390_v50 = vadd.f32 %v2450_v29, %v1234_v36 }
 0x1b8   : > { %v1394_v27 = vadd.f32 %v1834_v30, %v1238_v13  ;;  %v1388_v41 = vadd.f32 %v1371_v40, %v1232_v24  ;;  %v1237_v44 = vadd.f32 %v2414_v9, %v1081_v26 }
 0x1b9   : > { %v1331_v52 = vpop.f32.mrf.mxu1  ;;  %v1471_v59 = vpop.f32.mrf.mxu0 }
 0x1ba   : > { %v1539_v53 = vadd.f32 %v1471_v59, %v1383_v48  ;;  %v2603_v48 = vld [vmem:[#allocation22_spill] sm:$0xff]  ;;  %v1393_v29 = vadd.f32 %v1331_v52, %v1237_v44 }
 0x1bb   : > { %v1473_v1 = vpop.f32.mrf.mxu0  ;;  %v1839_v16 = vpop.f32.mrf.mxu1  ;;  %v1236_v49 = vadd.f32 %v2603_v48, %v1080_v34 }
 0x1bc   : > { %1551 = vst [vmem:[%s2479_s16] sm:$0xff] %v1539_v53  ;;  %v1540_v54 = vadd.f32 %v1473_v1, %v1384_v12  ;;  %v1547_v7 = vadd.f32 %v1839_v16, %v1391_v57 }
 0x1bd   : > { %v1475_v25 = vpop.f32.mrf.mxu0  ;;  %v1524_v0 = vpop.f32.mrf.mxu1  ;;  %v1392_v55 = vadd.f32 %v2463_v39, %v1236_v49 }
 0x1be   : > { %1552 = vst [vmem:[%s2479_s16 + $0x8] sm:$0xff] %v1540_v54  ;;  %1559 = vst [vmem:[%s2479_s16 + $0x40] sm:$0xff] %v1547_v7  ;;  %v1542_v28 = vadd.f32 %v1475_v25, %v1386_v11  ;;  %v1541_v31 = vadd.f32 %v1524_v0, %v1385_v17 }
 0x1bf   : > { %v1477_v63 = vpop.f32.mrf.mxu0  ;;  %v1840_v37 = vpop.f32.mrf.mxu1 }
 0x1c0   : > { %1554 = vst [vmem:[%s2479_s16 + $0x18] sm:$0xff] %v1542_v28  ;;  %1553 = vst [vmem:[%s2479_s16 + $0x10] sm:$0xff] %v1541_v31  ;;  %v1543_v15 = vadd.f32 %v1477_v63, %v1387_v20  ;;  %v1550_v30 = vadd.f32 %v1840_v37, %v1394_v27 }
 0x1c1   : > { %v1481_v43 = vpop.f32.mrf.mxu0  ;;  %v1527_v47 = vpop.f32.mrf.mxu1 }
 0x1c2   : > { %1555 = vst [vmem:[%s2479_s16 + $0x20] sm:$0xff] %v1543_v15  ;;  %1562 = vst [vmem:[%s2479_s16 + $0x58] sm:$0xff] %v1550_v30  ;;  %v1545_v19 = vadd.f32 %v1481_v43, %v1389_v38  ;;  %v1544_v40 = vadd.f32 %v1527_v47, %v1388_v41 }
 0x1c3   : > { %v1483_v51 = vpop.f32.mrf.mxu0 }
 0x1c4   : > { %1557 = vst [vmem:[%s2479_s16 + $0x30] sm:$0xff] %v1545_v19  ;;  %1556 = vst [vmem:[%s2479_s16 + $0x28] sm:$0xff] %v1544_v40  ;;  %v1546_v45 = vadd.f32 %v1483_v51, %v1390_v50 }
 0x1c5   : > { %v1485_v56 = vpop.f32.mrf.mxu0 }
 0x1c6   : > { %1558 = vst [vmem:[%s2479_s16 + $0x38] sm:$0xff] %v1546_v45  ;;  %v1548_v46 = vadd.f32 %v1485_v56, %v1392_v55 }
 0x1c7   : > { %v1487_v59 = vpop.f32.mrf.mxu0 }
 0x1c8   : > { %1560 = vst [vmem:[%s2479_s16 + $0x48] sm:$0xff] %v1548_v46  ;;  %v1549_v9 = vadd.f32 %v1487_v59, %v1393_v29 }
 0x1ca   : > { %1561 = vst [vmem:[%s2479_s16 + $0x50] sm:$0xff] %v1549_v9 }
 0x1cb   : > { %1951 = shalt.err (!%p1948_p5)
}
 0x1cc   : > { %s1952_s30 = scalar_lea.hbm %s2510_s12, 1536  ;;  %s1956_s5 = scalar_lea.hbm %s2565_s2, 3072 }
 0x1cd   : > { %p1953_p6 = scmp.ne.s32.totalorder %s2510_s12, %s1952_s30  ;;  %p1957_p10 = scmp.lt.s32.totalorder %s2510_s12, %s2565_s2 }
 0x1ce   : > { %p1958_p11 = scmp.lt.s32.totalorder %s1956_s5, %s1952_s30 }
 0x1cf   : > { %p1954_p7 = pnand %p1953_p6, %p2084_p4 }
 0x1d0   : > { %p1959_p12 = por %p1958_p11, %p1957_p10 }
 0x1d1   : > { %p1955_p9 = pneg %p1954_p7 }
 0x1d3   : > { %p1960_p13 = pnand %p1959_p12, %p1955_p9 }
 0x1d5   : > { %1963 = shalt.err (!%p1960_p13)
}
 0x1d6   : > { %s2027_s8 = smov 384   ;;  %s2028_s15 = smov 24  }
 0x1d7   : > { %1852 = dma.vmem_to_hbm [thread:$0]  (%p2084_p4), %s2512_s20, 1536, %s2510_s12, %s2518_s25, %s2027_s8, %s2027_s8, %s2028_s15  }
 0x1d8 PF: > { %p1858_p0 = scmp.ge.s32.totalorder %s2014_s14, 2  ;;  %s1594_s16 = sand.u32 1, %s1994_s9  }
 0x1d9   : > { %s1595_s18 = scalar_lea.sflag [#allocation3], %s1594_s16 }
 0x1da   : > { %p1855_p1 = pnand %p1858_p0, %p2091_p8 }
 0x1dc   : > { %p1856_p2 = pneg %p1855_p1 }
 0x1de   : > { %1989 = dma.done.wait (%p1856_p2), %s1595_s18, 1536  }
 0x1df   : > { %1991 = vsyncadd (%p1856_p2), %s1595_s18, 4294965760  ;;  %s15_s14 = sadd.s32 1, %s2014_s14   ;;  %s2604_s9 = smov %s1998_s10 }
 0x1e0   : > { %p12_p3 = scmp.ge.s32.totalorder %s15_s14, 4   ;;  %s2605_s10 = smov %s2002_s11 }
 0x1e1   : > { %s2606_s11 = smov %s2097_s22  ;;  %s2607_s12 = smov %s2010_s13 }
 0x1e2   : > { %s2608_s13 = smov %s2610_s17  ;;  %14 = sbr.rel (!%p12_p3) target bundleno = 4 (0x4), region = 72 }
 0x1e7   :  { %1600 = vsyncpa [#allocation3], 1 }
 0x1e8   :  { %1602 = vsyncpa [#allocation3 + $0x1], 1 }

</bundles_post_ra>
